<compile_context>
chip_gen: v6e
topology: v6e:2x2x1
jax: 0.10.0
libtpu: 0.0.40
codegen_flags: <defaults>
</compile_context>

<pallas_src>
import jax
import jax.numpy as jnp
from jax.experimental import pallas as pl
from jax.experimental.pallas import tpu as pltpu

MXU_DTYPE = jnp.bfloat16   # MXU operand dtype: full-rate on v5e/v6e/v7x


def _round_up(x, m):
    return ((x + m - 1) // m) * m


# ---------------------------------------------------------------------------
# Fused BasicStage kernel (all MLPBlocks of the stage; one image per grid step)
# ---------------------------------------------------------------------------
def _make_stage_kernel(depth, C, W, HW_pad, BLK, out_dtype):
    nrows = min(BLK, C)   # rows written per conv-tap block (>= cc, sublane-aligned)

    def kernel(x_ref, masks_ref, w1_ref, w2t_ref, o_ref, ops_ref):
        # Zero the merged-operand scratch once per grid step so rows that are
        # never written (block padding, tail padding) cannot hold stale VMEM
        # garbage (0 * NaN would poison the matmul).
        ops_ref[...] = jnp.zeros_like(ops_ref)
        # Constant 1s bias row; the BN shift lives in the last weight column.
        ops_ref[pl.ds(9 * BLK + C, 1), :] = jnp.ones((1, HW_pad), jnp.float32)

        masks = masks_ref[...]                      # (9, HW_pad) f32, hoisted
        act = x_ref[0].astype(jnp.float32)          # (C, HW_pad) channel-major, lane-dense

        # depth is small (2) -> keep unrolled.
        # TODO(synk): for depth > 2 switch to lax.fori_loop with dynamic
        #             w1_ref[l]/w2t_ref[l] indexing to bound live ranges.
        for l in range(depth):
            # ---- in-VMEM im2col of the partial 3x3 conv via XLU lane rolls ----
            # Tap b = dy*3+dx: roll act by (dy-1)*W+(dx-1) lanes; the border mask
            # zeros every position whose source pixel is outside the image, so
            # the circular wrap of roll never leaks across rows / the image end.
            for dy in range(3):
                for dx in range(3):
                    b = dy * 3 + dx
                    s = (dy - 1) * W + (dx - 1)
                    rolled = act if s == 0 else pltpu.roll(act, (-s) % HW_pad, axis=1)
                    ops_ref[pl.ds(b * BLK, nrows), :] = (
                        rolled[:nrows, :] * masks[b:b + 1, :])
            # Direct (untouched-channel) path: the full activation; its first cc
            # weight rows are zero because the conv output replaces them.
            ops_ref[pl.ds(9 * BLK, C), :] = act

            # ---- one merged MXU push: 3x3 conv + 1x1 conv + BN scale/shift ----
            ops = ops_ref[...].astype(MXU_DTYPE)
            h = jnp.dot(w1_ref[l], ops, preferred_element_type=jnp.float32)
            h = jnp.maximum(h, 0.0)                  # ReLU (shift already added via bias)
            # second 1x1 conv + residual shortcut (f32 accumulate / VPU add)
            act = act + jnp.dot(w2t_ref[l], h.astype(MXU_DTYPE),
                                preferred_element_type=jnp.float32)

        o_ref[0] = act.astype(out_dtype)

    return kernel


# ---------------------------------------------------------------------------
# BasicStage forward (wrapper; NCHW in / NCHW out like PyTorch)
# ---------------------------------------------------------------------------
def basic_stage_forward(x_nchw, folded):
    N, C, H, W = x_nchw.shape
    HW = H * W
    HW_pad = _round_up(HW, 128)          # lane-dense last dim (unmasked vst, aligned rolls)
    depth, ch, K_pad = folded["w1m"].shape
    BLK = folded["BLK"]
    assert K_pad >= 9 * BLK + C + 1

    # NCHW is already channel-major: flatten spatial dims onto the 128-lane axis.
    xf = x_nchw.reshape(N, C, HW).astype(jnp.float32)
    if HW_pad != HW:
        xf = jnp.pad(xf, ((0, 0), (0, 0), (0, HW_pad - HW)))

    # Border masks for the 9 conv taps (SAME zero padding + lane padding).
    p = jnp.arange(HW_pad, dtype=jnp.int32)
    row, col, valid = p // W, p % W, p < HW
    mask_list = []
    for dy in range(3):
        for dx in range(3):
            m = valid
            if dy == 0:
                m = m & (row != 0)
            elif dy == 2:
                m = m & (row != H - 1)
            if dx == 0:
                m = m & (col != 0)
            elif dx == 2:
                m = m & (col != W - 1)
            mask_list.append(m)
    masks = jnp.stack(mask_list).astype(jnp.float32)          # (9, HW_pad)

    kernel = _make_stage_kernel(depth, C, W, HW_pad, BLK, jnp.float32)

    # VMEM budget from the actual footprint: double-buffered in/out activation
    # blocks + masks + resident weights + im2col scratch; cap below v7x's 64 MiB.
    w_bytes = (folded["w1m"].size * folded["w1m"].dtype.itemsize
               + folded["w2t"].size * folded["w2t"].dtype.itemsize)
    footprint = (2 * 2 * C * HW_pad * 4          # act in + out, double-buffered
                 + 2 * 9 * HW_pad * 4            # masks, double-buffered
                 + 2 * w_bytes                   # weights, double-buffered
                 + K_pad * HW_pad * 4)           # merged-operand scratch
    vmem_limit = int(min(max(2 * footprint, 4 << 20), 48 << 20))

    out = pl.pallas_call(
        kernel,
        out_shape=jax.ShapeDtypeStruct((N, C, HW_pad), jnp.float32),
        grid_spec=pltpu.PrefetchScalarGridSpec(
            num_scalar_prefetch=0,
            grid=(N,),                                        # one image per step
            in_specs=[
                pl.BlockSpec((1, C, HW_pad), lambda n: (n, 0, 0)),      # activations
                pl.BlockSpec((9, HW_pad), lambda n: (0, 0)),            # border masks
                pl.BlockSpec((depth, ch, K_pad), lambda n: (0, 0, 0)),  # merged W1 (+bias)
                pl.BlockSpec((depth, C, ch), lambda n: (0, 0, 0)),      # W2^T
            ],
            out_specs=pl.BlockSpec((1, C, HW_pad), lambda n: (n, 0, 0)),
            scratch_shapes=[pltpu.VMEM((K_pad, HW_pad), jnp.float32)],  # im2col operand
        ),
        compiler_params=pltpu.CompilerParams(
            dimension_semantics=("parallel",),
            vmem_limit_bytes=vmem_limit,
        ),
    )(xf, masks, folded["w1m"], folded["w2t"])
    return out[:, :, :HW].reshape(N, C, H, W)


# ---------------------------------------------------------------------------
# Parameter init (deterministic, synthetic) and weight folding
# ---------------------------------------------------------------------------
def init_basic_stage_params(key, dim, depth, n_div, mlp_ratio,
                            drop_path=None, layer_scale_init_value=0.0):
    if drop_path is None:
        drop_path = [0.0] * depth
    assert all(pp == 0.0 for pp in drop_path), "DropPath>0 not modeled"
    assert layer_scale_init_value == 0.0, "layer_scale path not modeled"

    cc = dim // n_div
    ch = int(dim * mlp_ratio)
    eps = 1e-5
    raw = []
    for _ in range(depth):
        key, *ks = jax.random.split(key, 8)
        w_conv = 0.1 * jax.random.normal(ks[0], (3, 3, cc, cc), jnp.float32)  # HWIO
        w1 = 0.1 * jax.random.normal(ks[1], (dim, ch), jnp.float32)
        w2 = 0.1 * jax.random.normal(ks[2], (ch, dim), jnp.float32)
        gamma = 1.0 + 0.1 * jax.random.normal(ks[3], (ch,), jnp.float32)
        beta = 0.1 * jax.random.normal(ks[4], (ch,), jnp.float32)
        mean = 0.1 * jax.random.normal(ks[5], (ch,), jnp.float32)
        var = 1.0 + 0.1 * jnp.abs(jax.random.normal(ks[6], (ch,), jnp.float32))
        scale = gamma / jnp.sqrt(var + eps)        # folded inference BatchNorm
        shift = beta - mean * scale
        raw.append(dict(conv_hwio=w_conv, w1=w1, w2=w2, scale=scale, shift=shift))
    return raw, cc, ch


def fold_params(raw, cc, ch, dim, mxu_dtype=MXU_DTYPE):
    """Fold (conv3x3 -> concat -> 1x1 conv -> BN scale/shift) into ONE merged
    weight per layer, laid out to match the kernel's im2col scratch:
      [9 tap blocks of BLK cols, first cc used] [dim cols: direct path, first cc
      zeroed] [1 bias col = BN shift] [zero pad to K_pad]."""
    BLK = _round_up(cc, 8)
    K_pad = _round_up(9 * BLK + dim + 1, 8)
    w1m_l, w2t_l = [], []
    for p in raw:
        wc = p["conv_hwio"].reshape(9 * cc, cc)            # rows ordered (dy, dx, ci)
        scale = p["scale"][None, :]                        # (1, ch)
        wf = ((wc @ p["w1"][:cc]) * scale).T               # (ch, 9*cc): conv+1x1+BN scale
        w1m = jnp.zeros((ch, K_pad), jnp.float32)
        for b in range(9):
            w1m = w1m.at[:, b * BLK: b * BLK + cc].set(wf[:, b * cc:(b + 1) * cc])
        w1_direct = p["w1"].at[:cc, :].set(0.0)            # untouched channels only
        w1m = w1m.at[:, 9 * BLK: 9 * BLK + dim].set((w1_direct * scale).T)
        w1m = w1m.at[:, 9 * BLK + dim].set(p["shift"])     # BN shift as bias column
        w1m_l.append(w1m)
        w2t_l.append(p["w2"].T)                            # (dim, ch)
    return dict(BLK=BLK,
                w1m=jnp.stack(w1m_l).astype(mxu_dtype),
                w2t=jnp.stack(w2t_l).astype(mxu_dtype))


# ---------------------------------------------------------------------------
# Pure-JAX reference (un-folded weights) for a correctness check
# ---------------------------------------------------------------------------
def _ref_forward(x_nchw, raw, cc):
    x = jnp.transpose(x_nchw, (0, 2, 3, 1)).astype(jnp.float32)   # NHWC
    for p in raw:
        x1 = jax.lax.conv_general_dilated(
            x[..., :cc], p["conv_hwio"], (1, 1), "SAME",
            dimension_numbers=("NHWC", "HWIO", "NHWC"))
        xm = jnp.concatenate([x1, x[..., cc:]], axis=-1)
        h = jnp.einsum("nhwc,cd->nhwd", xm, p["w1"])
        h = jnp.maximum(h * p["scale"] + p["shift"], 0.0)
        x = x + jnp.einsum("nhwd,dc->nhwc", h, p["w2"])
    return jnp.transpose(x, (0, 3, 1, 2))


if __name__ == "__main__":
    dim, depth, n_div, mlp_ratio = 16, 2, 4, 2.0
    N, H, W = 2, 16, 16

    key = jax.random.PRNGKey(0)
    kx, kp = jax.random.split(key)
    x = jax.random.normal(kx, (N, dim, H, W), jnp.float32)        # NCHW input
    raw, cc, ch = init_basic_stage_params(kp, dim, depth, n_div, mlp_ratio)
    folded = fold_params(raw, cc, ch, dim)

    out = jax.block_until_ready(basic_stage_forward(x, folded))

    ref = jax.block_until_ready(_ref_forward(x, raw, cc))
    assert out.shape == (N, dim, H, W)
    # bf16 MXU operands with f32 accumulation -> slightly looser tolerance.
    assert jnp.allclose(out, ref, rtol=2e-2, atol=2e-2), "mismatch vs reference"

    print("KERNEL_OK")
</pallas_src>

<mosaic_0001>
module attributes {stable_mosaic.version = 11 : i64} {
  func.func @kernel(%arg0: i32, %arg1: memref<1x16x256xf32, #tpu.memory_space<vmem>>, %arg2: memref<9x256xf32, #tpu.memory_space<vmem>>, %arg3: memref<2x32x96xbf16, #tpu.memory_space<vmem>>, %arg4: memref<2x16x32xbf16, #tpu.memory_space<vmem>>, %arg5: memref<1x16x256xf32, #tpu.memory_space<vmem>>, %arg6: memref<96x256xf32, #tpu.memory_space<vmem>>) attributes {dimension_semantics = [#tpu.dimension_semantics<parallel>], iteration_bounds = array<i64: 2>, scalar_prefetch = 0 : i64, scratch_operands = 1 : i64, tpu.core_type = #tpu.core_type<tc>, window_params = [{transform_indices = @transform_0, window_bounds = array<i64: 1, 16, 256>}, {pipeline_mode = #tpu.pipeline_mode<synchronous>, transform_indices = @transform_1, window_bounds = array<i64: 9, 256>}, {pipeline_mode = #tpu.pipeline_mode<synchronous>, transform_indices = @transform_2, window_bounds = array<i64: 2, 32, 96>}, {pipeline_mode = #tpu.pipeline_mode<synchronous>, transform_indices = @transform_3, window_bounds = array<i64: 2, 16, 32>}, {transform_indices = @transform_4, window_bounds = array<i64: 1, 16, 256>}]} {
    %cst = arith.constant 0.000000e+00 : f32
    %0 = vector.broadcast %cst : f32 to vector<96x256xf32>
    %c0 = arith.constant 0 : index
    %c0_0 = arith.constant 0 : index
    %1 = vector.load %arg6[%c0, %c0_0] : memref<96x256xf32, #tpu.memory_space<vmem>>, vector<96x256xf32>
    tpu.vector_store %arg6[%c0, %c0_0], %0 {strides = array<i32>} : memref<96x256xf32, #tpu.memory_space<vmem>>, vector<96x256xf32>,
    %cst_1 = arith.constant 1.000000e+00 : f32
    %2 = vector.broadcast %cst_1 : f32 to vector<1x256xf32>
    %c88 = arith.constant 88 : index
    %c0_2 = arith.constant 0 : index
    %3 = vector.load %arg6[%c88, %c0_2] : memref<96x256xf32, #tpu.memory_space<vmem>>, vector<1x256xf32>
    tpu.vector_store %arg6[%c88, %c0_2], %2 {strides = array<i32>} : memref<96x256xf32, #tpu.memory_space<vmem>>, vector<1x256xf32>,
    %c0_3 = arith.constant 0 : index
    %c0_4 = arith.constant 0 : index
    %4 = vector.load %arg2[%c0_3, %c0_4] : memref<9x256xf32, #tpu.memory_space<vmem>>, vector<9x256xf32>
    %c0_5 = arith.constant 0 : index
    %c0_6 = arith.constant 0 : index
    %c0_7 = arith.constant 0 : index
    %5 = vector.load %arg1[%c0_5, %c0_6, %c0_7] : memref<1x16x256xf32, #tpu.memory_space<vmem>>, vector<1x16x256xf32>
    %6 = vector.shape_cast %5 : vector<1x16x256xf32> to vector<16x256xf32>
    %c17_i32 = arith.constant 17 : i32
    %7 = tpu.dynamic_rotate %6 by %c17_i32 dim 1 : vector<16x256xf32>, i32 -> vector<16x256xf32>
    %8 = vector.extract_strided_slice %7 {offsets = [0, 0], sizes = [8, 256], strides = [1, 1]} : vector<16x256xf32> to vector<8x256xf32>
    %9 = vector.extract_strided_slice %4 {offsets = [0, 0], sizes = [1, 256], strides = [1, 1]} : vector<9x256xf32> to vector<1x256xf32>
    %10 = vector.broadcast %9 : vector<1x256xf32> to vector<8x256xf32>
    %11 = arith.mulf %8, %10 : vector<8x256xf32>
    %c0_8 = arith.constant 0 : index
    %c0_9 = arith.constant 0 : index
    %12 = vector.load %arg6[%c0_8, %c0_9] : memref<96x256xf32, #tpu.memory_space<vmem>>, vector<8x256xf32>
    tpu.vector_store %arg6[%c0_8, %c0_9], %11 {strides = array<i32>} : memref<96x256xf32, #tpu.memory_space<vmem>>, vector<8x256xf32>,
    %c16_i32 = arith.constant 16 : i32
    %13 = tpu.dynamic_rotate %6 by %c16_i32 dim 1 : vector<16x256xf32>, i32 -> vector<16x256xf32>
    %14 = vector.extract_strided_slice %13 {offsets = [0, 0], sizes = [8, 256], strides = [1, 1]} : vector<16x256xf32> to vector<8x256xf32>
    %15 = vector.extract_strided_slice %4 {offsets = [1, 0], sizes = [1, 256], strides = [1, 1]} : vector<9x256xf32> to vector<1x256xf32>
    %16 = vector.broadcast %15 : vector<1x256xf32> to vector<8x256xf32>
    %17 = arith.mulf %14, %16 : vector<8x256xf32>
    %c8 = arith.constant 8 : index
    %c0_10 = arith.constant 0 : index
    %18 = vector.load %arg6[%c8, %c0_10] : memref<96x256xf32, #tpu.memory_space<vmem>>, vector<8x256xf32>
    tpu.vector_store %arg6[%c8, %c0_10], %17 {strides = array<i32>} : memref<96x256xf32, #tpu.memory_space<vmem>>, vector<8x256xf32>,
    %c15_i32 = arith.constant 15 : i32
    %19 = tpu.dynamic_rotate %6 by %c15_i32 dim 1 : vector<16x256xf32>, i32 -> vector<16x256xf32>
    %20 = vector.extract_strided_slice %19 {offsets = [0, 0], sizes = [8, 256], strides = [1, 1]} : vector<16x256xf32> to vector<8x256xf32>
    %21 = vector.extract_strided_slice %4 {offsets = [2, 0], sizes = [1, 256], strides = [1, 1]} : vector<9x256xf32> to vector<1x256xf32>
    %22 = vector.broadcast %21 : vector<1x256xf32> to vector<8x256xf32>
    %23 = arith.mulf %20, %22 : vector<8x256xf32>
    %c16 = arith.constant 16 : index
    %c0_11 = arith.constant 0 : index
    %24 = vector.load %arg6[%c16, %c0_11] : memref<96x256xf32, #tpu.memory_space<vmem>>, vector<8x256xf32>
    tpu.vector_store %arg6[%c16, %c0_11], %23 {strides = array<i32>} : memref<96x256xf32, #tpu.memory_space<vmem>>, vector<8x256xf32>,
    %c1_i32 = arith.constant 1 : i32
    %25 = tpu.dynamic_rotate %6 by %c1_i32 dim 1 : vector<16x256xf32>, i32 -> vector<16x256xf32>
    %26 = vector.extract_strided_slice %25 {offsets = [0, 0], sizes = [8, 256], strides = [1, 1]} : vector<16x256xf32> to vector<8x256xf32>
    %27 = vector.extract_strided_slice %4 {offsets = [3, 0], sizes = [1, 256], strides = [1, 1]} : vector<9x256xf32> to vector<1x256xf32>
    %28 = vector.broadcast %27 : vector<1x256xf32> to vector<8x256xf32>
    %29 = arith.mulf %26, %28 : vector<8x256xf32>
    %c24 = arith.constant 24 : index
    %c0_12 = arith.constant 0 : index
    %30 = vector.load %arg6[%c24, %c0_12] : memref<96x256xf32, #tpu.memory_space<vmem>>, vector<8x256xf32>
    tpu.vector_store %arg6[%c24, %c0_12], %29 {strides = array<i32>} : memref<96x256xf32, #tpu.memory_space<vmem>>, vector<8x256xf32>,
    %31 = vector.extract_strided_slice %6 {offsets = [0, 0], sizes = [8, 256], strides = [1, 1]} : vector<16x256xf32> to vector<8x256xf32>
    %32 = vector.extract_strided_slice %4 {offsets = [4, 0], sizes = [1, 256], strides = [1, 1]} : vector<9x256xf32> to vector<1x256xf32>
    %33 = vector.broadcast %32 : vector<1x256xf32> to vector<8x256xf32>
    %34 = arith.mulf %31, %33 : vector<8x256xf32>
    %c32 = arith.constant 32 : index
    %c0_13 = arith.constant 0 : index
    %35 = vector.load %arg6[%c32, %c0_13] : memref<96x256xf32, #tpu.memory_space<vmem>>, vector<8x256xf32>
    tpu.vector_store %arg6[%c32, %c0_13], %34 {strides = array<i32>} : memref<96x256xf32, #tpu.memory_space<vmem>>, vector<8x256xf32>,
    %c255_i32 = arith.constant 255 : i32
    %36 = tpu.dynamic_rotate %6 by %c255_i32 dim 1 : vector<16x256xf32>, i32 -> vector<16x256xf32>
    %37 = vector.extract_strided_slice %36 {offsets = [0, 0], sizes = [8, 256], strides = [1, 1]} : vector<16x256xf32> to vector<8x256xf32>
    %38 = vector.extract_strided_slice %4 {offsets = [5, 0], sizes = [1, 256], strides = [1, 1]} : vector<9x256xf32> to vector<1x256xf32>
    %39 = vector.broadcast %38 : vector<1x256xf32> to vector<8x256xf32>
    %40 = arith.mulf %37, %39 : vector<8x256xf32>
    %c40 = arith.constant 40 : index
    %c0_14 = arith.constant 0 : index
    %41 = vector.load %arg6[%c40, %c0_14] : memref<96x256xf32, #tpu.memory_space<vmem>>, vector<8x256xf32>
    tpu.vector_store %arg6[%c40, %c0_14], %40 {strides = array<i32>} : memref<96x256xf32, #tpu.memory_space<vmem>>, vector<8x256xf32>,
    %c241_i32 = arith.constant 241 : i32
    %42 = tpu.dynamic_rotate %6 by %c241_i32 dim 1 : vector<16x256xf32>, i32 -> vector<16x256xf32>
    %43 = vector.extract_strided_slice %42 {offsets = [0, 0], sizes = [8, 256], strides = [1, 1]} : vector<16x256xf32> to vector<8x256xf32>
    %44 = vector.extract_strided_slice %4 {offsets = [6, 0], sizes = [1, 256], strides = [1, 1]} : vector<9x256xf32> to vector<1x256xf32>
    %45 = vector.broadcast %44 : vector<1x256xf32> to vector<8x256xf32>
    %46 = arith.mulf %43, %45 : vector<8x256xf32>
    %c48 = arith.constant 48 : index
    %c0_15 = arith.constant 0 : index
    %47 = vector.load %arg6[%c48, %c0_15] : memref<96x256xf32, #tpu.memory_space<vmem>>, vector<8x256xf32>
    tpu.vector_store %arg6[%c48, %c0_15], %46 {strides = array<i32>} : memref<96x256xf32, #tpu.memory_space<vmem>>, vector<8x256xf32>,
    %c240_i32 = arith.constant 240 : i32
    %48 = tpu.dynamic_rotate %6 by %c240_i32 dim 1 : vector<16x256xf32>, i32 -> vector<16x256xf32>
    %49 = vector.extract_strided_slice %48 {offsets = [0, 0], sizes = [8, 256], strides = [1, 1]} : vector<16x256xf32> to vector<8x256xf32>
    %50 = vector.extract_strided_slice %4 {offsets = [7, 0], sizes = [1, 256], strides = [1, 1]} : vector<9x256xf32> to vector<1x256xf32>
    %51 = vector.broadcast %50 : vector<1x256xf32> to vector<8x256xf32>
    %52 = arith.mulf %49, %51 : vector<8x256xf32>
    %c56 = arith.constant 56 : index
    %c0_16 = arith.constant 0 : index
    %53 = vector.load %arg6[%c56, %c0_16] : memref<96x256xf32, #tpu.memory_space<vmem>>, vector<8x256xf32>
    tpu.vector_store %arg6[%c56, %c0_16], %52 {strides = array<i32>} : memref<96x256xf32, #tpu.memory_space<vmem>>, vector<8x256xf32>,
    %c239_i32 = arith.constant 239 : i32
    %54 = tpu.dynamic_rotate %6 by %c239_i32 dim 1 : vector<16x256xf32>, i32 -> vector<16x256xf32>
    %55 = vector.extract_strided_slice %54 {offsets = [0, 0], sizes = [8, 256], strides = [1, 1]} : vector<16x256xf32> to vector<8x256xf32>
    %56 = vector.extract_strided_slice %4 {offsets = [8, 0], sizes = [1, 256], strides = [1, 1]} : vector<9x256xf32> to vector<1x256xf32>
    %57 = vector.broadcast %56 : vector<1x256xf32> to vector<8x256xf32>
    %58 = arith.mulf %55, %57 : vector<8x256xf32>
    %c64 = arith.constant 64 : index
    %c0_17 = arith.constant 0 : index
    %59 = vector.load %arg6[%c64, %c0_17] : memref<96x256xf32, #tpu.memory_space<vmem>>, vector<8x256xf32>
    tpu.vector_store %arg6[%c64, %c0_17], %58 {strides = array<i32>} : memref<96x256xf32, #tpu.memory_space<vmem>>, vector<8x256xf32>,
    %c72 = arith.constant 72 : index
    %c0_18 = arith.constant 0 : index
    %60 = vector.load %arg6[%c72, %c0_18] : memref<96x256xf32, #tpu.memory_space<vmem>>, vector<16x256xf32>
    tpu.vector_store %arg6[%c72, %c0_18], %6 {strides = array<i32>} : memref<96x256xf32, #tpu.memory_space<vmem>>, vector<16x256xf32>,
    %c0_19 = arith.constant 0 : index
    %c0_20 = arith.constant 0 : index
    %61 = vector.load %arg6[%c0_19, %c0_20] : memref<96x256xf32, #tpu.memory_space<vmem>>, vector<96x256xf32>
    %62 = arith.truncf %61 : vector<96x256xf32> to vector<96x256xbf16>
    %c0_21 = arith.constant 0 : index
    %c0_22 = arith.constant 0 : index
    %c0_23 = arith.constant 0 : index
    %63 = vector.load %arg3[%c0_21, %c0_22, %c0_23] : memref<2x32x96xbf16, #tpu.memory_space<vmem>>, vector<1x32x96xbf16>
    %64 = vector.shape_cast %63 : vector<1x32x96xbf16> to vector<32x96xbf16>
    %cst_24 = arith.constant dense<0.000000e+00> : vector<32x256xf32>
    %65 = tpu.matmul %64, %62, %cst_24 {dimension_numbers = #tpu.dot_dimension_numbers<[1], [0], [0], [1], [0, 0, 1, 1], [], []>} : vector<32x96xbf16>, vector<96x256xbf16>, vector<32x256xf32> -> vector<32x256xf32>
    %cst_25 = arith.constant 0.000000e+00 : f32
    %66 = vector.broadcast %cst_25 : f32 to vector<32x256xf32>
    %67 = arith.maximumf %65, %66 : vector<32x256xf32>
    %c0_26 = arith.constant 0 : index
    %c0_27 = arith.constant 0 : index
    %c0_28 = arith.constant 0 : index
    %68 = vector.load %arg4[%c0_26, %c0_27, %c0_28] : memref<2x16x32xbf16, #tpu.memory_space<vmem>>, vector<1x16x32xbf16>
    %69 = vector.shape_cast %68 : vector<1x16x32xbf16> to vector<16x32xbf16>
    %70 = arith.truncf %67 : vector<32x256xf32> to vector<32x256xbf16>
    %cst_29 = arith.constant dense<0.000000e+00> : vector<16x256xf32>
    %71 = tpu.matmul %69, %70, %cst_29 {dimension_numbers = #tpu.dot_dimension_numbers<[1], [0], [0], [1], [0, 0, 1, 1], [], []>} : vector<16x32xbf16>, vector<32x256xbf16>, vector<16x256xf32> -> vector<16x256xf32>
    %72 = arith.addf %6, %71 : vector<16x256xf32>
    %c17_i32_30 = arith.constant 17 : i32
    %73 = tpu.dynamic_rotate %72 by %c17_i32_30 dim 1 : vector<16x256xf32>, i32 -> vector<16x256xf32>
    %74 = vector.extract_strided_slice %73 {offsets = [0, 0], sizes = [8, 256], strides = [1, 1]} : vector<16x256xf32> to vector<8x256xf32>
    %75 = vector.extract_strided_slice %4 {offsets = [0, 0], sizes = [1, 256], strides = [1, 1]} : vector<9x256xf32> to vector<1x256xf32>
    %76 = vector.broadcast %75 : vector<1x256xf32> to vector<8x256xf32>
    %77 = arith.mulf %74, %76 : vector<8x256xf32>
    %c0_31 = arith.constant 0 : index
    %c0_32 = arith.constant 0 : index
    %78 = vector.load %arg6[%c0_31, %c0_32] : memref<96x256xf32, #tpu.memory_space<vmem>>, vector<8x256xf32>
    tpu.vector_store %arg6[%c0_31, %c0_32], %77 {strides = array<i32>} : memref<96x256xf32, #tpu.memory_space<vmem>>, vector<8x256xf32>,
    %c16_i32_33 = arith.constant 16 : i32
    %79 = tpu.dynamic_rotate %72 by %c16_i32_33 dim 1 : vector<16x256xf32>, i32 -> vector<16x256xf32>
    %80 = vector.extract_strided_slice %79 {offsets = [0, 0], sizes = [8, 256], strides = [1, 1]} : vector<16x256xf32> to vector<8x256xf32>
    %81 = vector.extract_strided_slice %4 {offsets = [1, 0], sizes = [1, 256], strides = [1, 1]} : vector<9x256xf32> to vector<1x256xf32>
    %82 = vector.broadcast %81 : vector<1x256xf32> to vector<8x256xf32>
    %83 = arith.mulf %80, %82 : vector<8x256xf32>
    %c8_34 = arith.constant 8 : index
    %c0_35 = arith.constant 0 : index
    %84 = vector.load %arg6[%c8_34, %c0_35] : memref<96x256xf32, #tpu.memory_space<vmem>>, vector<8x256xf32>
    tpu.vector_store %arg6[%c8_34, %c0_35], %83 {strides = array<i32>} : memref<96x256xf32, #tpu.memory_space<vmem>>, vector<8x256xf32>,
    %c15_i32_36 = arith.constant 15 : i32
    %85 = tpu.dynamic_rotate %72 by %c15_i32_36 dim 1 : vector<16x256xf32>, i32 -> vector<16x256xf32>
    %86 = vector.extract_strided_slice %85 {offsets = [0, 0], sizes = [8, 256], strides = [1, 1]} : vector<16x256xf32> to vector<8x256xf32>
    %87 = vector.extract_strided_slice %4 {offsets = [2, 0], sizes = [1, 256], strides = [1, 1]} : vector<9x256xf32> to vector<1x256xf32>
    %88 = vector.broadcast %87 : vector<1x256xf32> to vector<8x256xf32>
    %89 = arith.mulf %86, %88 : vector<8x256xf32>
    %c16_37 = arith.constant 16 : index
    %c0_38 = arith.constant 0 : index
    %90 = vector.load %arg6[%c16_37, %c0_38] : memref<96x256xf32, #tpu.memory_space<vmem>>, vector<8x256xf32>
    tpu.vector_store %arg6[%c16_37, %c0_38], %89 {strides = array<i32>} : memref<96x256xf32, #tpu.memory_space<vmem>>, vector<8x256xf32>,
    %c1_i32_39 = arith.constant 1 : i32
    %91 = tpu.dynamic_rotate %72 by %c1_i32_39 dim 1 : vector<16x256xf32>, i32 -> vector<16x256xf32>
    %92 = vector.extract_strided_slice %91 {offsets = [0, 0], sizes = [8, 256], strides = [1, 1]} : vector<16x256xf32> to vector<8x256xf32>
    %93 = vector.extract_strided_slice %4 {offsets = [3, 0], sizes = [1, 256], strides = [1, 1]} : vector<9x256xf32> to vector<1x256xf32>
    %94 = vector.broadcast %93 : vector<1x256xf32> to vector<8x256xf32>
    %95 = arith.mulf %92, %94 : vector<8x256xf32>
    %c24_40 = arith.constant 24 : index
    %c0_41 = arith.constant 0 : index
    %96 = vector.load %arg6[%c24_40, %c0_41] : memref<96x256xf32, #tpu.memory_space<vmem>>, vector<8x256xf32>
    tpu.vector_store %arg6[%c24_40, %c0_41], %95 {strides = array<i32>} : memref<96x256xf32, #tpu.memory_space<vmem>>, vector<8x256xf32>,
    %97 = vector.extract_strided_slice %72 {offsets = [0, 0], sizes = [8, 256], strides = [1, 1]} : vector<16x256xf32> to vector<8x256xf32>
    %98 = vector.extract_strided_slice %4 {offsets = [4, 0], sizes = [1, 256], strides = [1, 1]} : vector<9x256xf32> to vector<1x256xf32>
    %99 = vector.broadcast %98 : vector<1x256xf32> to vector<8x256xf32>
    %100 = arith.mulf %97, %99 : vector<8x256xf32>
    %c32_42 = arith.constant 32 : index
    %c0_43 = arith.constant 0 : index
    %101 = vector.load %arg6[%c32_42, %c0_43] : memref<96x256xf32, #tpu.memory_space<vmem>>, vector<8x256xf32>
    tpu.vector_store %arg6[%c32_42, %c0_43], %100 {strides = array<i32>} : memref<96x256xf32, #tpu.memory_space<vmem>>, vector<8x256xf32>,
    %c255_i32_44 = arith.constant 255 : i32
    %102 = tpu.dynamic_rotate %72 by %c255_i32_44 dim 1 : vector<16x256xf32>, i32 -> vector<16x256xf32>
    %103 = vector.extract_strided_slice %102 {offsets = [0, 0], sizes = [8, 256], strides = [1, 1]} : vector<16x256xf32> to vector<8x256xf32>
    %104 = vector.extract_strided_slice %4 {offsets = [5, 0], sizes = [1, 256], strides = [1, 1]} : vector<9x256xf32> to vector<1x256xf32>
    %105 = vector.broadcast %104 : vector<1x256xf32> to vector<8x256xf32>
    %106 = arith.mulf %103, %105 : vector<8x256xf32>
    %c40_45 = arith.constant 40 : index
    %c0_46 = arith.constant 0 : index
    %107 = vector.load %arg6[%c40_45, %c0_46] : memref<96x256xf32, #tpu.memory_space<vmem>>, vector<8x256xf32>
    tpu.vector_store %arg6[%c40_45, %c0_46], %106 {strides = array<i32>} : memref<96x256xf32, #tpu.memory_space<vmem>>, vector<8x256xf32>,
    %c241_i32_47 = arith.constant 241 : i32
    %108 = tpu.dynamic_rotate %72 by %c241_i32_47 dim 1 : vector<16x256xf32>, i32 -> vector<16x256xf32>
    %109 = vector.extract_strided_slice %108 {offsets = [0, 0], sizes = [8, 256], strides = [1, 1]} : vector<16x256xf32> to vector<8x256xf32>
    %110 = vector.extract_strided_slice %4 {offsets = [6, 0], sizes = [1, 256], strides = [1, 1]} : vector<9x256xf32> to vector<1x256xf32>
    %111 = vector.broadcast %110 : vector<1x256xf32> to vector<8x256xf32>
    %112 = arith.mulf %109, %111 : vector<8x256xf32>
    %c48_48 = arith.constant 48 : index
    %c0_49 = arith.constant 0 : index
    %113 = vector.load %arg6[%c48_48, %c0_49] : memref<96x256xf32, #tpu.memory_space<vmem>>, vector<8x256xf32>
    tpu.vector_store %arg6[%c48_48, %c0_49], %112 {strides = array<i32>} : memref<96x256xf32, #tpu.memory_space<vmem>>, vector<8x256xf32>,
    %c240_i32_50 = arith.constant 240 : i32
    %114 = tpu.dynamic_rotate %72 by %c240_i32_50 dim 1 : vector<16x256xf32>, i32 -> vector<16x256xf32>
    %115 = vector.extract_strided_slice %114 {offsets = [0, 0], sizes = [8, 256], strides = [1, 1]} : vector<16x256xf32> to vector<8x256xf32>
    %116 = vector.extract_strided_slice %4 {offsets = [7, 0], sizes = [1, 256], strides = [1, 1]} : vector<9x256xf32> to vector<1x256xf32>
    %117 = vector.broadcast %116 : vector<1x256xf32> to vector<8x256xf32>
    %118 = arith.mulf %115, %117 : vector<8x256xf32>
    %c56_51 = arith.constant 56 : index
    %c0_52 = arith.constant 0 : index
    %119 = vector.load %arg6[%c56_51, %c0_52] : memref<96x256xf32, #tpu.memory_space<vmem>>, vector<8x256xf32>
    tpu.vector_store %arg6[%c56_51, %c0_52], %118 {strides = array<i32>} : memref<96x256xf32, #tpu.memory_space<vmem>>, vector<8x256xf32>,
    %c239_i32_53 = arith.constant 239 : i32
    %120 = tpu.dynamic_rotate %72 by %c239_i32_53 dim 1 : vector<16x256xf32>, i32 -> vector<16x256xf32>
    %121 = vector.extract_strided_slice %120 {offsets = [0, 0], sizes = [8, 256], strides = [1, 1]} : vector<16x256xf32> to vector<8x256xf32>
    %122 = vector.extract_strided_slice %4 {offsets = [8, 0], sizes = [1, 256], strides = [1, 1]} : vector<9x256xf32> to vector<1x256xf32>
    %123 = vector.broadcast %122 : vector<1x256xf32> to vector<8x256xf32>
    %124 = arith.mulf %121, %123 : vector<8x256xf32>
    %c64_54 = arith.constant 64 : index
    %c0_55 = arith.constant 0 : index
    %125 = vector.load %arg6[%c64_54, %c0_55] : memref<96x256xf32, #tpu.memory_space<vmem>>, vector<8x256xf32>
    tpu.vector_store %arg6[%c64_54, %c0_55], %124 {strides = array<i32>} : memref<96x256xf32, #tpu.memory_space<vmem>>, vector<8x256xf32>,
    %c72_56 = arith.constant 72 : index
    %c0_57 = arith.constant 0 : index
    %126 = vector.load %arg6[%c72_56, %c0_57] : memref<96x256xf32, #tpu.memory_space<vmem>>, vector<16x256xf32>
    tpu.vector_store %arg6[%c72_56, %c0_57], %72 {strides = array<i32>} : memref<96x256xf32, #tpu.memory_space<vmem>>, vector<16x256xf32>,
    %c0_58 = arith.constant 0 : index
    %c0_59 = arith.constant 0 : index
    %127 = vector.load %arg6[%c0_58, %c0_59] : memref<96x256xf32, #tpu.memory_space<vmem>>, vector<96x256xf32>
    %128 = arith.truncf %127 : vector<96x256xf32> to vector<96x256xbf16>
    %c1 = arith.constant 1 : index
    %c0_60 = arith.constant 0 : index
    %c0_61 = arith.constant 0 : index
    %129 = vector.load %arg3[%c1, %c0_60, %c0_61] : memref<2x32x96xbf16, #tpu.memory_space<vmem>>, vector<1x32x96xbf16>
    %130 = vector.shape_cast %129 : vector<1x32x96xbf16> to vector<32x96xbf16>
    %cst_62 = arith.constant dense<0.000000e+00> : vector<32x256xf32>
    %131 = tpu.matmul %130, %128, %cst_62 {dimension_numbers = #tpu.dot_dimension_numbers<[1], [0], [0], [1], [0, 0, 1, 1], [], []>} : vector<32x96xbf16>, vector<96x256xbf16>, vector<32x256xf32> -> vector<32x256xf32>
    %cst_63 = arith.constant 0.000000e+00 : f32
    %132 = vector.broadcast %cst_63 : f32 to vector<32x256xf32>
    %133 = arith.maximumf %131, %132 : vector<32x256xf32>
    %c1_64 = arith.constant 1 : index
    %c0_65 = arith.constant 0 : index
    %c0_66 = arith.constant 0 : index
    %134 = vector.load %arg4[%c1_64, %c0_65, %c0_66] : memref<2x16x32xbf16, #tpu.memory_space<vmem>>, vector<1x16x32xbf16>
    %135 = vector.shape_cast %134 : vector<1x16x32xbf16> to vector<16x32xbf16>
    %136 = arith.truncf %133 : vector<32x256xf32> to vector<32x256xbf16>
    %cst_67 = arith.constant dense<0.000000e+00> : vector<16x256xf32>
    %137 = tpu.matmul %135, %136, %cst_67 {dimension_numbers = #tpu.dot_dimension_numbers<[1], [0], [0], [1], [0, 0, 1, 1], [], []>} : vector<16x32xbf16>, vector<32x256xbf16>, vector<16x256xf32> -> vector<16x256xf32>
    %138 = arith.addf %72, %137 : vector<16x256xf32>
    %c0_68 = arith.constant 0 : index
    %c0_69 = arith.constant 0 : index
    %c0_70 = arith.constant 0 : index
    %139 = vector.load %arg5[%c0_68, %c0_69, %c0_70] : memref<1x16x256xf32, #tpu.memory_space<vmem>>, vector<1x16x256xf32>
    %140 = vector.shape_cast %139 : vector<1x16x256xf32> to vector<16x256xf32>
    %141 = vector.shape_cast %138 : vector<16x256xf32> to vector<1x16x256xf32>
    tpu.vector_store %arg5[%c0_68, %c0_69, %c0_70], %141 {strides = array<i32>} : memref<1x16x256xf32, #tpu.memory_space<vmem>>, vector<1x16x256xf32>,
    return
  }
  func.func @transform_0(%arg0: i32) -> (i32, i32, i32) {
    %c0_i32 = arith.constant 0 : i32
    %c0_i32_0 = arith.constant 0 : i32
    %c0_i32_1 = arith.constant 0 : i32
    return %arg0, %c0_i32, %c0_i32_0 : i32, i32, i32
  }
  func.func @transform_1(%arg0: i32) -> (i32, i32) {
    %c0_i32 = arith.constant 0 : i32
    %c0_i32_0 = arith.constant 0 : i32
    %c0_i32_1 = arith.constant 0 : i32
    return %c0_i32, %c0_i32_0 : i32, i32
  }
  func.func @transform_2(%arg0: i32) -> (i32, i32, i32) {
    %c0_i32 = arith.constant 0 : i32
    %c0_i32_0 = arith.constant 0 : i32
    %c0_i32_1 = arith.constant 0 : i32
    %c0_i32_2 = arith.constant 0 : i32
    return %c0_i32, %c0_i32_0, %c0_i32_1 : i32, i32, i32
  }
  func.func @transform_3(%arg0: i32) -> (i32, i32, i32) {
    %c0_i32 = arith.constant 0 : i32
    %c0_i32_0 = arith.constant 0 : i32
    %c0_i32_1 = arith.constant 0 : i32
    %c0_i32_2 = arith.constant 0 : i32
    return %c0_i32, %c0_i32_0, %c0_i32_1 : i32, i32, i32
  }
  func.func @transform_4(%arg0: i32) -> (i32, i32, i32) {
    %c0_i32 = arith.constant 0 : i32
    %c0_i32_0 = arith.constant 0 : i32
    %c0_i32_1 = arith.constant 0 : i32
    return %arg0, %c0_i32, %c0_i32_0 : i32, i32, i32
  }
}

</mosaic_0001>

<bundles_post_ra>
// kernel: tpu_custom_call.1
= control target key start
LH: loop header
LB: loop body
LE: loop exit
PB: predicated region body
PF: predicated region fallthrough
CT: control target
= control target key end

     0   :  { %9 = vsyncpa [#allocation4], 0  ;;  %s1909_s0 = inlined_call_operand.hbm [shape: f32[2,16,256], index: 0, kind: input, shape index: {}]   ;;  %s1910_s1 = inlined_call_operand.hbm [shape: f32[9,256], index: 1, kind: input, shape index: {}]   ;;  %s1911_s2 = inlined_call_operand.hbm [shape: bf16[2,32,96], index: 2, kind: input, shape index: {}]   ;;  %s1912_s3 = inlined_call_operand.hbm [shape: bf16[2,16,32], index: 3, kind: input, shape index: {}]   ;;  %s1913_s4 = inlined_call_operand.hbm [shape: f32[2,16,256], index: 4, kind: output, shape index: {}]  }
   0x1   :  { %11 = vsyncpa [#allocation4 + $0x1], 0 }
   0x2   :  { %12 = vsyncpa [#allocation7], 0 }
   0x3   :  { %13 = vsyncpa [#allocation10], 0 }
   0x4   :  { %14 = vsyncpa [#allocation5], 0 }
   0x5   :  { %16 = vsyncpa [#allocation5 + $0x1], 0  ;;  %s1399_s15 = smov 0   ;;  %s1401_s16 = smov 0  }
   0x6   :  { %s1403_s17 = smov 0   ;;  %s1405_s18 = smov 0  }
   0x7 LB: > { %s1420_s19 = sadd.s32 4294967295, %s1351_s18   ;;  %s1038_s20 = sadd.s32 4294967294, %s1351_s18   ;;  %s1351_s18 = sphi %s1405_s18, %s1936_s18   ;;  %s1347_s17 = sphi %s1403_s17, %s1935_s17   ;;  %s1343_s16 = sphi %s1401_s16, %s1934_s16   ;;  %s1339_s15 = sphi %s1399_s15, %s1933_s15  }
   0x8   : > { %p42_p0 = scmp.ne.s32.totalorder %s1343_s16, %s1339_s15  ;;  %p1914_p1 = scmp.eq.s32.totalorder %s1420_s19, 0 }
   0x9   : > { %p129_p2 = scmp.eq.s32.totalorder %s1420_s19, 1  ;;  %p135_p3 = scmp.eq.s32.totalorder %s1038_s20, 1 }
   0xa   : > { %p1429_p4 = por %p1914_p1, %p42_p0  ;;  %p1039_p5 = scmp.ge.s32.totalorder %s1351_s18, 1 }
   0xb   : > { %p1434_p6 = por %p135_p3, %p42_p0  ;;  %p142_p7 = scmp.lt.s32.totalorder %s1351_s18, 3 }
   0xc   : > { %s1918_s21 = scalar_select %p1429_p4, 1, 0 }
   0xd   : > { %s1919_s22 = scalar_select %p1434_p6, 1, 0 }
   0xe   : > { %p1439_p8 = pnand %p1039_p5, %p142_p7  ;;  %s1353_s24 = smov [#allocation6]  }
   0xf   : > { %s154_s25 = sshll.u32 %s1353_s24, 4  ;;  %s1354_s27 = smov [#allocation8]   ;;  %s155_s25 = int_to_ptr.vmem [resolvable:$true] %s154_s25 }
  0x10   : > { %s1920_s23 = scalar_select %p1439_p8, 1, 0 }
  0x11   : > { %p1090_p9 = pneg %p1439_p8  ;;  %s167_s28 = sshll.u32 %s1354_s27, 4  ;;  %s168_s28 = int_to_ptr.vmem [resolvable:$true] %s167_s28 }
  0x12   : > { %s1184_s29 = scalar_lea.vmem %s155_s25, 512  ;;  %p1192_p5 = scmp.lt.s32.totalorder %s155_s25, %s155_s25 }
  0x13   : > { %p1448_p11 = pnand %p1090_p9, %p1914_p1  ;;  %p1185_p13 = scmp.ne.s32.totalorder %s155_s25, %s1184_s29 }
  0x14   : > { %p1193_p7 = scmp.lt.s32.totalorder %s1184_s29, %s1184_s29 }
  0x15   : > { %p1175_p12 = pneg %p1448_p11 }
  0x16   : > { %p1194_p10 = por %p1193_p7, %p1192_p5 }
  0x17   : > { %p1187_p0 = pnand %p1185_p13, %p1175_p12 }
  0x19   : > { %p1188_p3 = pneg %p1187_p0 }
  0x1b   : > { %p1195_p9 = pnand %p1194_p10, %p1188_p3 }
  0x1d   : > { %1198 = shalt.err (!%p1195_p9)
}
  0x1e   : > { %s1355_s30 = smov 256   ;;  %s1356_s5 = smov 16  }
  0x1f   : > { %1093 = dma.hbm_to_vmem [thread:$0]  (!%p1448_p11), %s1910_s1, 512, %s155_s25, [#allocation7], %s1355_s30, %s1355_s30, %s1356_s5  }
  0x20   : > { %s1210_s8 = scalar_lea.vmem %s168_s28, 512  ;;  %p1218_p10 = scmp.lt.s32.totalorder %s168_s28, %s168_s28 }
  0x21   : > { %p1211_p13 = scmp.ne.s32.totalorder %s168_s28, %s1210_s8  ;;  %p1219_p3 = scmp.lt.s32.totalorder %s1210_s8, %s1210_s8 }
  0x23   : > { %p1213_p0 = pnand %p1211_p13, %p1175_p12  ;;  %p1220_p7 = por %p1219_p3, %p1218_p10 }
  0x25   : > { %p1214_p5 = pneg %p1213_p0 }
  0x27   : > { %p1221_p9 = pnand %p1220_p7, %p1214_p5 }
  0x29   : > { %1224 = shalt.err (!%p1221_p9)
}
  0x2a   : > { %s1357_s9 = smov 64   ;;  %s1358_s10 = smov 4  }
  0x2b   : > { %1096 = dma.hbm_to_vmem [thread:$0]  (!%p1448_p11), %s1911_s2, 512, %s168_s28, [#allocation7], %s1357_s9, %s1357_s9, %s1358_s10  }
  0x2c   : > { %s1359_s13 = smov [#allocation9]   ;;  %s1474_s20 = sadd.s32 1, %s1351_s18  }
  0x2d   : > { %s180_s14 = sshll.u32 %s1359_s13, 4  ;;  %s181_s14 = int_to_ptr.vmem [resolvable:$true] %s180_s14 }
  0x2e   : > { %s1236_s24 = scalar_lea.vmem %s181_s14, 256  ;;  %p1244_p10 = scmp.lt.s32.totalorder %s181_s14, %s181_s14 }
  0x2f   : > { %p1237_p13 = scmp.ne.s32.totalorder %s181_s14, %s1236_s24  ;;  %p1245_p3 = scmp.lt.s32.totalorder %s1236_s24, %s1236_s24 }
  0x31   : > { %p1239_p0 = pnand %p1237_p13, %p1175_p12  ;;  %p1246_p7 = por %p1245_p3, %p1244_p10 }
  0x33   : > { %p1240_p5 = pneg %p1239_p0 }
  0x35   : > { %p1247_p9 = pnand %p1246_p7, %p1240_p5 }
  0x37   : > { %1250 = shalt.err (!%p1247_p9)
}
  0x38   : > { %1099 = dma.hbm_to_vmem [thread:$0]  (!%p1448_p11), %s1912_s3, 256, %s181_s14, [#allocation10], %s1357_s9, %s1357_s9, %s1358_s10  }
  0x39   : > { %s26_s28 = ssub.s32 %s1351_s18, %s1474_s20  ;;  %s29_s29 = sadd.s32 1, %s1347_s17 }
  0x3a   : > { %p27_p12 = scmp.eq.s32.totalorder %s26_s28, 0  ;;  %p36_p13 = scmp.ne.s32.totalorder %s1347_s17, %s1343_s16 }
  0x3b   : > { %p37_p0 = scmp.eq.s32.totalorder %s1351_s18, 0  ;;  %p1111_p5 = scmp.lt.s32.totalorder %s1351_s18, 2 }
  0x3c   : > { %s1492_s26 = scalar_select %p27_p12, %s1347_s17, %s29_s29  }
  0x3d   : > { %p38_p10 = por %p37_p0, %p36_p13  ;;  %p1496_p3 = por %p129_p2, %p36_p13 }
  0x3e   : > { %s194_s7 = sand.u32 1, %s1347_s17   ;;  %s1072_s8 = sshll.u32 %s1351_s18, 9 }
  0x3f   : > { %s1922_s6 = scalar_select %p1496_p3, 1, 0 }
  0x40   : > { %s1044_s11 = sshll.u32 %s194_s7, 5  ;;  %s1505_s9 = scalar_lea.hbm %s1909_s0, %s1072_s8 }
  0x41   : > { %s198_s10 = scalar_lea.vmem [#allocation3], %s1044_s11  ;;  %p1507_p11 = pnand %p1111_p5, %p38_p10 }
  0x42   : > { %s205_s14 = sshll.u32 %s198_s10, 4  ;;  %s1513_s25 = scalar_lea.sflag [#allocation4], %s194_s7  ;;  %s1511_s14 = int_to_ptr.vmem [resolvable:$true] %s205_s14 }
  0x43   : > { %s1251_s27 = scalar_lea.hbm %s1505_s9, 512  ;;  %p1253_p7 = pneg %p1507_p11 }
  0x44   : > { %p1252_p2 = scmp.ne.s32.totalorder %s1505_s9, %s1251_s27  ;;  %s1256_s8 = scalar_lea.hbm %s1909_s0, 1024 }
  0x45   : > { %p1257_p13 = scmp.lt.s32.totalorder %s1505_s9, %s1909_s0  ;;  %p1258_p0 = scmp.lt.s32.totalorder %s1256_s8, %s1251_s27 }
  0x46   : > { %p1254_p9 = pnand %p1253_p7, %p1252_p2 }
  0x47   : > { %p1259_p5 = por %p1258_p0, %p1257_p13 }
  0x48   : > { %p1255_p12 = pneg %p1254_p9 }
  0x4a   : > { %p1260_p10 = pnand %p1259_p5, %p1255_p12 }
  0x4c   : > { %1263 = shalt.err (!%p1260_p10)
}
  0x4d   : > { %s1264_s7 = scalar_lea.vmem %s1511_s14, 512  ;;  %s1360_s13 = smov [#allocation3]  }
  0x4e   : > { %p1265_p1 = scmp.ne.s32.totalorder %s1511_s14, %s1264_s7  ;;  %s1269_s10 = sshll.u32 %s1360_s13, 4  ;;  %s1270_s10 = int_to_ptr.vmem [resolvable:$false] %s1269_s10 }
  0x4f   : > { %s1271_s28 = scalar_lea.vmem %s1270_s10, 1024  ;;  %p1272_p9 = scmp.lt.s32.totalorder %s1511_s14, %s1270_s10 }
  0x50   : > { %p1267_p6 = pnand %p1265_p1, %p1253_p7  ;;  %p1273_p3 = scmp.lt.s32.totalorder %s1271_s28, %s1264_s7 }
  0x52   : > { %p1268_p2 = pneg %p1267_p6  ;;  %p1274_p4 = por %p1273_p3, %p1272_p9 }
  0x54   : > { %p1275_p8 = pnand %p1274_p4, %p1268_p2 }
  0x56   : > { %1278 = shalt.err (!%p1275_p8)
}
  0x57   : > { %1103 = dma.hbm_to_vmem [thread:$0]  (!%p1507_p11), %s1505_s9, 512, %s1511_s14, %s1513_s25, %s1355_s30, %s1355_s30, %s1356_s5  }
  0x58   : > { %p1924_p1 = scmp.ne.s32.totalorder %s1920_s23, 0 }
  0x59   : > { %s1540_s27 = sand.u32 (!%p1924_p1), 1, %s1343_s16   ;;  %p1925_p4 = scmp.ne.s32.totalorder (!%p1924_p1), %s1918_s21, 0 }
  0x5a   : > { %217 = sbr.rel (%p1924_p1) target bundleno = 1258 (0x4ea), region = 36  ;;  %s1048_s29 = sshll.u32 (!%p1924_p1), %s1540_s27, 5 }
  0x5b   : > { %s220_s8 = scalar_lea.sflag (!%p1924_p1), [#allocation4], %s1540_s27  ;;  %s223_s24 = scalar_lea.vmem (!%p1924_p1), [#allocation3], %s1048_s29 }
  0x5f   : > { %1322 = dma.done.wait (%p1925_p4), %s220_s8, 512  }
  0x60   : > { %1324 = vsyncadd (%p1925_p4), %s220_s8, 4294966784  ;;  %p1926_p6 = scmp.eq.s32.totalorder %s1420_s19, 0 }
  0x62   : > { %1326 = dma.done.wait (%p1926_p6), [#allocation7], 1024   ;;  %p1927_p8 = pmov %p1926_p6 }
  0x63   : > { %p1928_p3 = pmov %p1926_p6 }
  0x64   : > { %1328 = vsyncadd (%p1927_p8), [#allocation7], 4294966272 }
  0x65   : > { %1330 = dma.done.wait (%p1928_p3), [#allocation10], 256   ;;  %p1929_p11 = pmov %p1928_p3 }
  0x66   : > { %v285_v0 = vlaneseq  ;;  %v1361_v1 = vmov 0.0   ;;  %v1362_v2 = vmov 1.0   ;;  %v1558_v3 = vld [vmem:[%s223_s24] sm:$0xff]  ;;  %s1363_s21 = smov 113   ;;  %s1364_s23 = smov 111   ;;  %v1564_v4 = vld [vmem:[%s223_s24 + $0x8] sm:$0xff] }
  0x67   : > { %1332 = vsyncadd (%p1929_p11), [#allocation10], 4294967040  ;;  %283 = vst [vmem:[#allocation2 + $0xb0] sm:$0xff] %v1361_v1  ;;  %409 = vrot.lane.b32.xlu1 %v1558_v3, %s1363_s21  ;;  %447 = vrot.lane.b32.xlu0 %v1558_v3, %s1364_s23  ;;  %v1566_v5 = vld [vmem:[%s223_s24 + $0x18] sm:$0xff]  ;;  %v1568_v6 = vld [vmem:[%s223_s24 + $0x10] sm:$0xff]  ;;  %s1365_s30 = smov 112  }
  0x68   : > { %284 = vst [vmem:[#allocation2 + $0xb8] sm:$0xff] %v1361_v1  ;;  %vm287_vm0 = vcmp.lt.s32.totalorder %v285_v0, 256  ;;  %s1366_s5 = smov 127   ;;  %s1367_s9 = smov 15   ;;  %v1369_v11 = vmov 0   ;;  %v1608_v12 = vshrl.u32 %v285_v0, 7 }
  0x69   : > { %290 = vst.msk [vmem:[#allocation2 + $0xb0] ss:$8 sm:$0x3] %vm287_vm0, %v1362_v2  ;;  %s1368_s14 = smov 1   ;;  %559 = vmatprep.mubr.bf16.mxu0 %v1369_v11  ;;  %635 = vmatprep.mubr.bf16.mxu1 %v1369_v11  ;;  %s1370_s25 = smov 17   ;;  %v1610_v13 = vand.u32 127, %v285_v0 }
  0x6a   : > { %s1371_s11 = smov 16   ;;  %v418_v16 = vsub.s32 6, %v1608_v12  ;;  %v437_v17 = vsub.s32 7, %v1608_v12  ;;  %v1614_v18 = vld [vmem:[#allocation6] sm:$0xff]  ;;  %v1617_v19 = vld [vmem:[#allocation6 + $0x8] sm:$0xff]  ;;  %v380_v22 = vsub.s32 4, %v1608_v12 }
  0x6b   : > { %411 = vrot.lane.b32.xlu1 %v1564_v4, %s1363_s21  ;;  %449 = vrot.lane.b32.xlu0 %v1564_v4, %s1364_s23  ;;  %vm451_vm1 = vcmp.lt.s32.totalorder %v1610_v13, 111  ;;  %v1619_v20 = vld [vmem:[#allocation6 + $0x10] ss:$0 sm:$0xff]  ;;  %v1621_v21 = vld [vmem:[#allocation6 + $0x18] ss:$0 sm:$0xff]  ;;  %vm413_vm2 = vcmp.lt.s32.totalorder %v1610_v13, 113 }
  0x6c   : > { %vm432_vm3 = vcmp.lt.s32.totalorder %v1610_v13, 112  ;;  %v399_v25 = vsub.s32 5, %v1608_v12  ;;  %v1628_v26 = vrot.slane %v1614_v18, %v418_v16  ;;  %v1635_v29 = vrot.slane %v1614_v18, %v437_v17  ;;  %s259_s12 = scalar_lea.vmem [#allocation11], %s1048_s29  ;;  %s1073_s13 = sshll.u32 %s1420_s19, 9 }
  0x6d   : > { %v1638_v30 = vrot.slane %v1617_v19, %v418_v16  ;;  %v1643_v33 = vrot.slane %v1617_v19, %v437_v17  ;;  %vm394_vm4 = vcmp.lt.s32.totalorder %v1610_v13, 127  ;;  %v1651_v36 = vrot.slane %v1614_v18, %v380_v22  ;;  %s936_s7 = sshll.u32 %s259_s12, 4  ;;  %s1865_s29 = scalar_lea.hbm %s1913_s4, %s1073_s13  ;;  %s1859_s7 = int_to_ptr.vmem [resolvable:$true] %s936_s7 }
  0x6e   : > { %v1654_v37 = vrot.slane %v1617_v19, %v380_v22  ;;  %v1663_v44 = vrot.slane %v1614_v18, %v399_v25  ;;  %v1666_v45 = vrot.slane %v1617_v19, %v399_v25  ;;  %v349_v58 = vsub.s32 2, %v1608_v12  ;;  %s923_s8 = scalar_lea.sflag [#allocation5], %s1540_s27  ;;  %s1279_s19 = scalar_lea.vmem %s1859_s7, 512 }
  0x6f   : > { %430 = vrot.lane.b32.xlu1 %v1564_v4, %s1365_s30  ;;  %428 = vrot.lane.b32.xlu0 %v1558_v3, %s1365_s30  ;;  %v386_v50 = vmul.f32 %v1651_v36, %v1558_v3  ;;  %v368_v61 = vsub.s32 3, %v1608_v12  ;;  %vm344_vm5 = vcmp.lt.s32.totalorder %v1610_v13, 15  ;;  %vm363_vm6 = vcmp.lt.s32.totalorder %v1610_v13, 1  ;;  %p1280_p7 = scmp.ne.s32.totalorder %s1859_s7, %s1279_s19  ;;  %p1930_p12 = scmp.ne.s32.totalorder %s1922_s6, 0 }
  0x70   : > { %v1570_v7 = vld [vmem:[#allocation2 + $0xb8] sm:$0xff]  ;;  %v1572_v8 = vld [vmem:[#allocation2 + $0xb0] sm:$0xff]  ;;  %v387_v51 = vmul.f32 %v1654_v37, %v1564_v4  ;;  %v1686_v2 = vrot.slane %v1614_v18, %v349_v58  ;;  %v311_v25 = vsub.s32 0, %v1608_v12  ;;  %vm306_vm7 = vcmp.lt.s32.totalorder %v1610_v13, 17  ;;  %s1372_s24 = smov [#allocation11]  }
  0x71   : > { %v505_v9 = vpack.c.bf16 %v1570_v7, %v1566_v5  ;;  %v504_v10 = vpack.c.bf16 %v1572_v8, %v1568_v6  ;;  %vm325_vm8 = vcmp.lt.s32.totalorder %v1610_v13, 16  ;;  %vm520_vm9 = vcmask 785408   ;;  %p1281_p13 = pnand %p1280_p7, %p1930_p12 }
  0x72   : > { %vm599_vm10 = vcmask 261120  }
  0x73   : > { %531 = vmatprep.subr.bf16.mxu0 %v505_v9  ;;  %392 = vrot.lane.b32.xlu1 %v1564_v4, %s1366_s5  ;;  %v1689_v9 = vrot.slane %v1617_v19, %v349_v58  ;;  %p1282_p0 = pneg %p1281_p13 }
  0x74   : > { %532 = vmatpush1.bf16.msra.mxu0 %v504_v10  ;;  %390 = vrot.lane.b32.xlu0 %v1558_v3, %s1366_s5  ;;  %v1693_v10 = vrot.slane %v1614_v18, %v368_v61 }
  0x77   : > { %342 = vrot.lane.b32.xlu1 %v1564_v4, %s1367_s9 }
  0x78   : > { %340 = vrot.lane.b32.xlu0 %v1558_v3, %s1367_s9 }
  0x7b   : > { %361 = vrot.lane.b32.xlu1 %v1564_v4, %s1368_s14 }
  0x7c   : > { %359 = vrot.lane.b32.xlu0 %v1558_v3, %s1368_s14 }
  0x7f   : > { %302 = vrot.lane.b32.xlu1 %v1564_v4, %s1370_s25 }
  0x80   : > { %300 = vrot.lane.b32.xlu0 %v1558_v3, %s1370_s25 }
  0x83   : > { %323 = vrot.lane.b32.xlu1 %v1564_v4, %s1371_s11 }
  0x84   : > { %321 = vrot.lane.b32.xlu0 %v1558_v3, %s1371_s11 }
  0xd9   : > { %v410_v14 = vpop.permute.xlu1 %409  ;;  %v448_v15 = vpop.permute.xlu0 %447 }
  0xdd   : > { %v412_v23 = vpop.permute.xlu1 %411  ;;  %v450_v24 = vpop.permute.xlu0 %449 }
  0xde   : > { %v452_v27 = vsel %vm451_vm1, %v448_v15, %v450_v24  ;;  %v453_v28 = vsel %vm451_vm1, %v450_v24, %v448_v15  ;;  %v414_v34 = vsel %vm413_vm2, %v410_v14, %v412_v23  ;;  %v415_v35 = vsel %vm413_vm2, %v412_v23, %v410_v14 }
  0xdf   : > { %v462_v31 = vmul.f32 %v1619_v20, %v452_v27  ;;  %v463_v32 = vmul.f32 %v1621_v21, %v453_v28  ;;  %v424_v46 = vmul.f32 %v1628_v26, %v414_v34  ;;  %v425_v47 = vmul.f32 %v1638_v30, %v415_v35 }
  0xe0   : > { %v1696_v14 = vrot.slane %v1617_v19, %v368_v61  ;;  %v330_v27 = vsub.s32 1, %v1608_v12 }
  0xe1   : > { %v431_v38 = vpop.permute.xlu1 %430  ;;  %v429_v39 = vpop.permute.xlu0 %428  ;;  %v503_v40 = vpack.c.bf16 %v1564_v4, %v463_v32  ;;  %v502_v41 = vpack.c.bf16 %v1558_v3, %v462_v31 }
  0xe2   : > { %v433_v42 = vsel %vm432_vm3, %v429_v39, %v431_v38  ;;  %v434_v43 = vsel %vm432_vm3, %v431_v38, %v429_v39  ;;  %v1721_v12 = vrot.slane %v1614_v18, %v330_v27 }
  0xe3   : > { %v443_v48 = vmul.f32 %v1635_v29, %v433_v42  ;;  %v444_v49 = vmul.f32 %v1643_v33, %v434_v43  ;;  %533 = vmatprep.subr.bf16.mxu0 %v503_v40  ;;  %v1717_v42 = vrot.slane %v1617_v19, %v311_v25  ;;  %v1724_v43 = vrot.slane %v1617_v19, %v330_v27 }
  0xe4   : > { %534 = vmatpush1.bf16.msra.mxu0 %v502_v41  ;;  %v1714_v41 = vrot.slane %v1614_v18, %v311_v25 }
  0xe5   : > { %v393_v52 = vpop.permute.xlu1 %392  ;;  %v501_v54 = vpack.c.bf16 %v444_v49, %v425_v47  ;;  %v500_v55 = vpack.c.bf16 %v443_v48, %v424_v46 }
  0xe6   : > { %v391_v53 = vpop.permute.xlu0 %390 }
  0xe7   : > { %v395_v56 = vsel %vm394_vm4, %v391_v53, %v393_v52  ;;  %v396_v57 = vsel %vm394_vm4, %v393_v52, %v391_v53  ;;  %535 = vmatprep.subr.bf16.mxu0 %v501_v54 }
  0xe8   : > { %v405_v59 = vmul.f32 %v1663_v44, %v395_v56  ;;  %v406_v60 = vmul.f32 %v1666_v45, %v396_v57  ;;  %536 = vmatpush1.bf16.msra.mxu0 %v500_v55  ;;  %v1167_v56 = vld [vmem:[#allocation8] sm:$0xff]   ;;  %v1168_v57 = vld [vmem:[#allocation8 + $0x8] sm:$0xff]  }
  0xe9   : > { %v343_v62 = vpop.permute.xlu1 %342 }
  0xea   : > { %v341_v63 = vpop.permute.xlu0 %340  ;;  %v499_v0 = vpack.c.bf16 %v406_v60, %v387_v51  ;;  %v498_v1 = vpack.c.bf16 %v405_v59, %v386_v50 }
  0xeb   : > { %v345_v15 = vsel %vm344_vm5, %v341_v63, %v343_v62  ;;  %v346_v16 = vsel %vm344_vm5, %v343_v62, %v341_v63 }
  0xec   : > { %537 = vmatprep.subr.bf16.mxu0 %v499_v0  ;;  %v355_v28 = vmul.f32 %v1686_v2, %v346_v16  ;;  %v356_v31 = vmul.f32 %v1689_v9, %v345_v15 }
  0xed   : > { %538 = vmatpush1.bf16.msra.mxu0 %v498_v1  ;;  %v362_v17 = vpop.permute.xlu1 %361 }
  0xee   : > { %v360_v22 = vpop.permute.xlu0 %359 }
  0xef   : > { %v364_v23 = vsel %vm363_vm6, %v360_v22, %v362_v17  ;;  %v365_v24 = vsel %vm363_vm6, %v362_v17, %v360_v22 }
  0xf0   : > { %v374_v32 = vmul.f32 %v1693_v10, %v365_v24  ;;  %v375_v34 = vmul.f32 %v1696_v14, %v364_v23 }
  0xf1   : > { %v303_v35 = vpop.permute.xlu1 %302 }
  0xf2   : > { %v301_v38 = vpop.permute.xlu0 %300  ;;  %v497_v39 = vpack.c.bf16 %v375_v34, %v356_v31  ;;  %v496_v40 = vpack.c.bf16 %v374_v32, %v355_v28 }
  0xf3   : > { %v307_v46 = vsel %vm306_vm7, %v301_v38, %v303_v35  ;;  %v308_v47 = vsel %vm306_vm7, %v303_v35, %v301_v38  ;;  %v1169_v35 = vld [vmem:[#allocation9] sm:$0xff]  }
  0xf4   : > { %539 = vmatprep.subr.bf16.mxu0 %v497_v39  ;;  %v317_v51 = vmul.f32 %v1714_v41, %v308_v47  ;;  %v318_v19 = vmul.f32 %v1717_v42, %v307_v46 }
  0xf5   : > { %540 = vmatpush1.bf16.msra.mxu0 %v496_v40  ;;  %v324_v48 = vpop.permute.xlu1 %323 }
  0xf6   : > { %v322_v49 = vpop.permute.xlu0 %321 }
  0xf7   : > { %v326_v50 = vsel %vm325_vm8, %v322_v49, %v324_v48  ;;  %v327_v18 = vsel %vm325_vm8, %v324_v48, %v322_v49 }
  0xf8   : > { %v336_v52 = vmul.f32 %v1721_v12, %v327_v18  ;;  %v337_v53 = vmul.f32 %v1724_v43, %v326_v50 }
  0xfa   : > { %v495_v54 = vpack.c.bf16 %v337_v53, %v318_v19  ;;  %v494_v55 = vpack.c.bf16 %v336_v52, %v317_v51 }
  0xfc   : > { %541 = vmatprep.subr.bf16.mxu0 %v495_v54 }
  0xfd   : > { %542 = vmatpush1.bf16.msra.mxu0 %v494_v55 }
 0x100   : > { %1057 = vmatmul.mubr.msk.bf16.vlgmr.msra.gmra.mxu0 %vm520_vm9, %v1167_v56 }
 0x101   : > { %569 = vmatprep.mubr.bf16.mxu0 %v1369_v11 }
 0x108   : > { %1058 = vmatmul.mubr.msk.bf16.gmra.mxu0 %vm520_vm9, %v1168_v57 }
 0x109   : > { %903 = vmatprep.mubr.bf16.mxu0 %v1369_v11 }
 0x1c0   : > { %v561_v58 = vpop.f32.mrf.mxu0 }
 0x1c1   : > { %v580_v32 = vmax.f32 %v561_v58, 0.0 }
 0x1c2   : > { %v563_v59 = vpop.f32.mrf.mxu0 }
 0x1c3   : > { %v581_v24 = vmax.f32 %v563_v59, 0.0 }
 0x1c4   : > { %v565_v60 = vpop.f32.mrf.mxu0 }
 0x1c5   : > { %v582_v27 = vmax.f32 %v565_v60, 0.0 }
 0x1c6   : > { %v567_v61 = vpop.f32.mrf.mxu0 }
 0x1c7   : > { %v583_v16 = vmax.f32 %v567_v61, 0.0  ;;  %v590_v34 = vpack.c.bf16 %v582_v27, %v580_v32 }
 0x1c8   : > { %v571_v62 = vpop.f32.mrf.mxu0 }
 0x1c9   : > { %v584_v23 = vmax.f32 %v571_v62, 0.0  ;;  %v591_v31 = vpack.c.bf16 %v583_v16, %v581_v24 }
 0x1ca   : > { %v573_v63 = vpop.f32.mrf.mxu0 }
 0x1cb   : > { %v585_v17 = vmax.f32 %v573_v63, 0.0 }
 0x1cc   : > { %v575_v0 = vpop.f32.mrf.mxu0 }
 0x1cd   : > { %v586_v1 = vmax.f32 %v575_v0, 0.0 }
 0x1ce   : > { %v577_v15 = vpop.f32.mrf.mxu0 }
 0x1cf   : > { %v587_v22 = vmax.f32 %v577_v15, 0.0  ;;  %v592_v28 = vpack.c.bf16 %v586_v1, %v584_v23 }
 0x1d1   : > { %v593_v25 = vpack.c.bf16 %v587_v22, %v585_v17 }
 0x1d3   : > { %615 = vmatprep.subr.bf16.mxu1 %v593_v25 }
 0x1d4   : > { %616 = vmatpush1.bf16.msra.mxu1 %v592_v28 }
 0x1d5   : > { %617 = vmatprep.subr.bf16.mxu1 %v591_v31 }
 0x1d8   : > { %618 = vmatpush1.bf16.msra.mxu1 %v590_v34 }
 0x1db   : > { %1060 = vmatmul.mubr.msk.bf16.vlgmr.msra.gmra.mxu1 %vm599_vm10, %v1169_v35 }
 0x1dc   : > { %827 = vmatprep.mubr.bf16.mxu1 %v1369_v11 }
 0x29b   : > { %v637_v38 = vpop.f32.mrf.mxu1 }
 0x29c   : > { %v1745_v39 = vadd.f32 %v637_v38, %v1558_v3 }
 0x29d   : > { %v639_v40 = vpop.f32.mrf.mxu1 }
 0x29e   : > { %v1748_v46 = vadd.f32 %v639_v40, %v1564_v4  ;;  %724 = vrot.lane.b32.xlu0 %v1745_v39, %s1364_s23  ;;  %v1754_v47 = vmul.f32 %v1745_v39, %v1651_v36 }
 0x29f   : > { %v641_v48 = vpop.f32.mrf.mxu1 }
 0x2a0   : > { %v1757_v49 = vadd.f32 %v641_v48, %v1568_v6  ;;  %726 = vrot.lane.b32.xlu1 %v1748_v46, %s1364_s23  ;;  %v691_v3 = vmul.f32 %v1748_v46, %v1654_v37 }
 0x2a1   : > { %v643_v50 = vpop.f32.mrf.mxu1 }
 0x2a2   : > { %v1764_v4 = vadd.f32 %v643_v50, %v1566_v5  ;;  %704 = vrot.lane.b32.xlu0 %v1745_v39, %s1363_s21  ;;  %v772_v36 = vpack.c.bf16 %v1572_v8, %v1757_v49 }
 0x2a4   : > { %706 = vrot.lane.b32.xlu1 %v1748_v46, %s1363_s21  ;;  %v773_v6 = vpack.c.bf16 %v1570_v7, %v1764_v4  ;;  %s1283_s21 = sshll.u32 %s1372_s24, 4  ;;  %s1284_s21 = int_to_ptr.vmem [resolvable:$false] %s1283_s21 }
 0x2a5   : > { %s1285_s23 = scalar_lea.vmem %s1284_s21, 1024  ;;  %p1286_p5 = scmp.lt.s32.totalorder %s1859_s7, %s1284_s21 }
 0x2a6   : > { %714 = vrot.lane.b32.xlu0 %v1745_v39, %s1365_s30  ;;  %799 = vmatprep.subr.bf16.mxu1 %v773_v6  ;;  %p1287_p10 = scmp.lt.s32.totalorder %s1285_s23, %s1279_s19 }
 0x2a7   : > { %800 = vmatpush1.bf16.msra.mxu1 %v772_v36 }
 0x2a8   : > { %716 = vrot.lane.b32.xlu1 %v1748_v46, %s1365_s30  ;;  %p1288_p2 = por %p1287_p10, %p1286_p5 }
 0x2aa   : > { %694 = vrot.lane.b32.xlu0 %v1745_v39, %s1366_s5  ;;  %p1289_p9 = pnand %p1288_p2, %p1282_p0 }
 0x2ac   : > { %696 = vrot.lane.b32.xlu1 %v1748_v46, %s1366_s5 }
 0x2ae   : > { %670 = vrot.lane.b32.xlu0 %v1745_v39, %s1367_s9 }
 0x2b0   : > { %672 = vrot.lane.b32.xlu1 %v1748_v46, %s1367_s9 }
 0x2b2   : > { %680 = vrot.lane.b32.xlu0 %v1745_v39, %s1368_s14 }
 0x2b4   : > { %682 = vrot.lane.b32.xlu1 %v1748_v46, %s1368_s14 }
 0x2b6   : > { %650 = vrot.lane.b32.xlu0 %v1745_v39, %s1370_s25 }
 0x2b8   : > { %652 = vrot.lane.b32.xlu1 %v1748_v46, %s1370_s25 }
 0x2ba   : > { %660 = vrot.lane.b32.xlu0 %v1745_v39, %s1371_s11 }
 0x2bc   : > { %662 = vrot.lane.b32.xlu1 %v1748_v46, %s1371_s11 }
 0x310   : > { %v725_v5 = vpop.permute.xlu0 %724 }
 0x312   : > { %v727_v7 = vpop.permute.xlu1 %726 }
 0x313   : > { %v728_v8 = vsel %vm451_vm1, %v725_v5, %v727_v7  ;;  %v729_v37 = vsel %vm451_vm1, %v727_v7, %v725_v5 }
 0x314   : > { %v730_v18 = vmul.f32 %v1619_v20, %v728_v8  ;;  %v731_v51 = vmul.f32 %v1621_v21, %v729_v37  ;;  %v705_v19 = vpop.permute.xlu0 %704 }
 0x316   : > { %v707_v52 = vpop.permute.xlu1 %706  ;;  %v771_v53 = vpack.c.bf16 %v1748_v46, %v731_v51  ;;  %v770_v54 = vpack.c.bf16 %v1745_v39, %v730_v18 }
 0x317   : > { %v708_v55 = vsel %vm413_vm2, %v705_v19, %v707_v52  ;;  %v709_v56 = vsel %vm413_vm2, %v707_v52, %v705_v19 }
 0x318   : > { %v710_v57 = vmul.f32 %v708_v55, %v1628_v26  ;;  %v711_v58 = vmul.f32 %v709_v56, %v1638_v30  ;;  %v715_v59 = vpop.permute.xlu0 %714  ;;  %801 = vmatprep.subr.bf16.mxu1 %v771_v53 }
 0x319   : > { %802 = vmatpush1.bf16.msra.mxu1 %v770_v54 }
 0x31a   : > { %v717_v20 = vpop.permute.xlu1 %716 }
 0x31b   : > { %v718_v21 = vsel %vm432_vm3, %v715_v59, %v717_v20  ;;  %v719_v60 = vsel %vm432_vm3, %v717_v20, %v715_v59 }
 0x31c   : > { %v720_v61 = vmul.f32 %v718_v21, %v1635_v29  ;;  %v721_v62 = vmul.f32 %v719_v60, %v1643_v33  ;;  %v695_v63 = vpop.permute.xlu0 %694 }
 0x31e   : > { %v697_v0 = vpop.permute.xlu1 %696  ;;  %v769_v1 = vpack.c.bf16 %v721_v62, %v711_v58  ;;  %v768_v26 = vpack.c.bf16 %v720_v61, %v710_v57 }
 0x31f   : > { %v698_v30 = vsel %vm394_vm4, %v695_v63, %v697_v0  ;;  %v699_v15 = vsel %vm394_vm4, %v697_v0, %v695_v63  ;;  %v1172_v63 = vld [vmem:[#allocation9 + $0x8] sm:$0xff]  }
 0x320   : > { %v700_v16 = vmul.f32 %v698_v30, %v1663_v44  ;;  %v701_v17 = vmul.f32 %v699_v15, %v1666_v45  ;;  %v671_v22 = vpop.permute.xlu0 %670  ;;  %803 = vmatprep.subr.bf16.mxu1 %v769_v1 }
 0x321   : > { %804 = vmatpush1.bf16.msra.mxu1 %v768_v26 }
 0x322   : > { %v673_v29 = vpop.permute.xlu1 %672  ;;  %v767_v23 = vpack.c.bf16 %v701_v17, %v691_v3  ;;  %v766_v33 = vpack.c.bf16 %v700_v16, %v1754_v47 }
 0x323   : > { %v674_v24 = vsel %vm344_vm5, %v671_v22, %v673_v29  ;;  %v675_v25 = vsel %vm344_vm5, %v673_v29, %v671_v22 }
 0x324   : > { %v676_v27 = vmul.f32 %v675_v25, %v1686_v2  ;;  %v677_v28 = vmul.f32 %v674_v24, %v1689_v9  ;;  %v681_v44 = vpop.permute.xlu0 %680  ;;  %805 = vmatprep.subr.bf16.mxu1 %v767_v23 }
 0x325   : > { %806 = vmatpush1.bf16.msra.mxu1 %v766_v33 }
 0x326   : > { %v683_v45 = vpop.permute.xlu1 %682 }
 0x327   : > { %v684_v31 = vsel %vm363_vm6, %v681_v44, %v683_v45  ;;  %v685_v32 = vsel %vm363_vm6, %v683_v45, %v681_v44 }
 0x328   : > { %v686_v34 = vmul.f32 %v685_v32, %v1693_v10  ;;  %v687_v35 = vmul.f32 %v684_v31, %v1696_v14  ;;  %v651_v38 = vpop.permute.xlu0 %650 }
 0x32a   : > { %v653_v40 = vpop.permute.xlu1 %652  ;;  %v765_v47 = vpack.c.bf16 %v687_v35, %v677_v28  ;;  %v764_v2 = vpack.c.bf16 %v686_v34, %v676_v27 }
 0x32b   : > { %v654_v9 = vsel %vm306_vm7, %v651_v38, %v653_v40  ;;  %v655_v48 = vsel %vm306_vm7, %v653_v40, %v651_v38 }
 0x32c   : > { %v656_v3 = vmul.f32 %v655_v48, %v1714_v41  ;;  %v657_v50 = vmul.f32 %v654_v9, %v1717_v42  ;;  %807 = vmatprep.subr.bf16.mxu1 %v765_v47  ;;  %v661_v6 = vpop.permute.xlu0 %660  ;;  %v1170_v41 = vld [vmem:[#allocation8 + $0x10] sm:$0xff]   ;;  %v1171_v42 = vld [vmem:[#allocation8 + $0x18] sm:$0xff]  }
 0x32d   : > { %808 = vmatpush1.bf16.msra.mxu1 %v764_v2 }
 0x32e   : > { %v663_v10 = vpop.permute.xlu1 %662 }
 0x32f   : > { %v664_v14 = vsel %vm325_vm8, %v661_v6, %v663_v10  ;;  %v665_v36 = vsel %vm325_vm8, %v663_v10, %v661_v6 }
 0x330   : > { %v666_v5 = vmul.f32 %v665_v36, %v1721_v12  ;;  %v667_v7 = vmul.f32 %v664_v14, %v1724_v43 }
 0x332   : > { %v763_v8 = vpack.c.bf16 %v667_v7, %v657_v50  ;;  %v762_v37 = vpack.c.bf16 %v666_v5, %v656_v3 }
 0x334   : > { %809 = vmatprep.subr.bf16.mxu1 %v763_v8 }
 0x335   : > { %810 = vmatpush1.bf16.msra.mxu1 %v762_v37 }
 0x338   : > { %1063 = vmatmul.mubr.msk.bf16.vlgmr.msra.gmra.mxu1 %vm520_vm9, %v1170_v41 }
 0x339   : > { %837 = vmatprep.mubr.bf16.mxu1 %v1369_v11 }
 0x340   : > { %1064 = vmatmul.mubr.msk.bf16.gmra.mxu1 %vm520_vm9, %v1171_v42 }
 0x3f8   : > { %v829_v18 = vpop.f32.mrf.mxu1 }
 0x3f9   : > { %v848_v61 = vmax.f32 %v829_v18, 0.0 }
 0x3fa   : > { %v831_v51 = vpop.f32.mrf.mxu1 }
 0x3fb   : > { %v849_v59 = vmax.f32 %v831_v51, 0.0 }
 0x3fc   : > { %v833_v13 = vpop.f32.mrf.mxu1 }
 0x3fd   : > { %v850_v11 = vmax.f32 %v833_v13, 0.0 }
 0x3fe   : > { %v835_v19 = vpop.f32.mrf.mxu1 }
 0x3ff   : > { %v851_v55 = vmax.f32 %v835_v19, 0.0  ;;  %v859_v62 = vpack.c.bf16 %v850_v11, %v848_v61 }
 0x400   : > { %v839_v52 = vpop.f32.mrf.mxu1 }
 0x401   : > { %v852_v58 = vmax.f32 %v839_v52, 0.0  ;;  %v860_v60 = vpack.c.bf16 %v851_v55, %v849_v59 }
 0x402   : > { %v841_v12 = vpop.f32.mrf.mxu1 }
 0x403   : > { %v853_v56 = vmax.f32 %v841_v12, 0.0 }
 0x404   : > { %v843_v53 = vpop.f32.mrf.mxu1 }
 0x405   : > { %v854_v43 = vmax.f32 %v843_v53, 0.0 }
 0x406   : > { %v845_v54 = vpop.f32.mrf.mxu1 }
 0x407   : > { %v855_v57 = vmax.f32 %v845_v54, 0.0  ;;  %v861_v21 = vpack.c.bf16 %v854_v43, %v852_v58 }
 0x409   : > { %v862_v20 = vpack.c.bf16 %v855_v57, %v853_v56 }
 0x40b   : > { %883 = vmatprep.subr.bf16.mxu0 %v862_v20 }
 0x40c   : > { %884 = vmatpush1.bf16.msra.mxu0 %v861_v21 }
 0x40d   : > { %885 = vmatprep.subr.bf16.mxu0 %v860_v60 }
 0x410   : > { %886 = vmatpush1.bf16.msra.mxu0 %v859_v62 }
 0x413   : > { %1066 = vmatmul.mubr.msk.bf16.vlgmr.msra.gmra.mxu0 %vm599_vm10, %v1172_v63 }
 0x4d3   : > { %v905_v0 = vpop.f32.mrf.mxu0 }
 0x4d4   : > { %v914_v1 = vadd.f32 %v905_v0, %v1745_v39 }
 0x4d5   : > { %v907_v26 = vpop.f32.mrf.mxu0 }
 0x4d6   : > { %918 = vst [vmem:[%s259_s12] sm:$0xff] %v914_v1  ;;  %v915_v30 = vadd.f32 %v907_v26, %v1748_v46 }
 0x4d7   : > { %v909_v15 = vpop.f32.mrf.mxu0 }
 0x4d8   : > { %919 = vst [vmem:[%s259_s12 + $0x8] sm:$0xff] %v915_v30  ;;  %v916_v16 = vadd.f32 %v909_v15, %v1757_v49 }
 0x4d9   : > { %v911_v39 = vpop.f32.mrf.mxu0 }
 0x4da   : > { %920 = vst [vmem:[%s259_s12 + $0x10] sm:$0xff] %v916_v16  ;;  %v917_v17 = vadd.f32 %v911_v39, %v1764_v4 }
 0x4dc   : > { %921 = vst [vmem:[%s259_s12 + $0x18] sm:$0xff] %v917_v17 }
 0x4dd   : > { %1292 = shalt.err (!%p1289_p9)
}
 0x4de   : > { %s1293_s30 = scalar_lea.hbm %s1865_s29, 512  ;;  %s1297_s14 = scalar_lea.hbm %s1913_s4, 1024 }
 0x4df   : > { %p1294_p1 = scmp.ne.s32.totalorder %s1865_s29, %s1293_s30  ;;  %p1298_p8 = scmp.lt.s32.totalorder %s1865_s29, %s1913_s4 }
 0x4e0   : > { %p1299_p3 = scmp.lt.s32.totalorder %s1297_s14, %s1293_s30 }
 0x4e1   : > { %p1295_p4 = pnand %p1294_p1, %p1930_p12 }
 0x4e2   : > { %p1300_p11 = por %p1299_p3, %p1298_p8 }
 0x4e3   : > { %p1296_p6 = pneg %p1295_p4 }
 0x4e5   : > { %p1301_p7 = pnand %p1300_p11, %p1296_p6 }
 0x4e7   : > { %1304 = shalt.err (!%p1301_p7)
}
 0x4e8   : > { %s1373_s13 = smov 256  }
 0x4e9   : > { %1088 = dma.vmem_to_hbm [thread:$0]  (%p1930_p12), %s1859_s7, 512, %s1865_s29, %s923_s8, %s1373_s13, %s1373_s13, %s1371_s11  }
 0x4ea PF: > { %s951_s10 = sand.u32 1, %s1339_s15   ;;  %p1931_p13 = scmp.ne.s32.totalorder %s1919_s22, 0 }
 0x4eb   : > { %p1932_p0 = scmp.ge.s32.totalorder %s1351_s18, 2  ;;  %s952_s28 = scalar_lea.sflag [#allocation5], %s951_s10 }
 0x4ed   : > { %p1105_p5 = pnand %p1932_p0, %p1931_p13 }
 0x4ef   : > { %p1106_p10 = pneg %p1105_p5 }
 0x4f1   : > { %1334 = dma.done.wait (%p1106_p10), %s952_s28, 512  }
 0x4f2   : > { %1336 = vsyncadd (%p1106_p10), %s952_s28, 4294966784  ;;  %p19_p2 = scmp.ge.s32.totalorder %s1474_s20, 4   ;;  %s1933_s15 = smov %s1343_s16 }
 0x4f3   : > { %s1934_s16 = smov %s1347_s17  ;;  %s1935_s17 = smov %s1492_s26 }
 0x4f4   : > { %s1936_s18 = smov %s1474_s20  ;;  %21 = sbr.rel (!%p19_p2) target bundleno = 7 (0x7), region = 96 }
 0x4f9   :  { %957 = vsyncpa [#allocation4], 1 }
 0x4fa   :  { %959 = vsyncpa [#allocation4 + $0x1], 1 }
 0x4fb   :  { %960 = vsyncpa [#allocation7], 1 }
 0x4fc   :  { %961 = vsyncpa [#allocation10], 1 }
 0x4fd   :  { %962 = vsyncpa [#allocation5], 1 }
 0x4fe   :  { %964 = vsyncpa [#allocation5 + $0x1], 1 }

</bundles_post_ra>
